<compile_context>
chip_gen: v7x
topology: tpu7x:2x2x1
jax: 0.10.0
libtpu: 0.0.40
codegen_flags: <defaults>
</compile_context>

<pallas_src>
import jax
import jax.numpy as jnp
from jax.experimental import pallas as pl
from jax.experimental.pallas import tpu as pltpu


def _round_up(x, m):
    return ((x + m - 1) // m) * m


def _attention_kernel(h_ref, dec_ref, enc_ref,
                      wa_h_ref, wa_e_ref, ba_ref,
                      wa2_ref,
                      wc_d_ref, wc_a_ref, bc_ref,
                      packed_ref):
    """One batch tile: additive scores -> softmax -> weighted sum -> combine."""
    S, TB, E = enc_ref.shape
    D = h_ref.shape[1]
    H2 = wa_e_ref.shape[1]          # 2 * E
    P = packed_ref.shape[1]         # round_up(D + E, 128)

    enc = enc_ref[...]                                   # (S, TB, E)  f32, time-major
    hidden = h_ref[...]                                  # (TB, D)

    # ---- additive attention scores ------------------------------------------
    # attn(cat(hidden, enc[s])) = hidden @ Wa_h + enc[s] @ Wa_e + ba   (concat-free)
    # MXU inputs in bf16 (native on v5e/v6e/v7x), accumulation in f32.
    h_part = jnp.dot(hidden.astype(jnp.bfloat16),
                     wa_h_ref[...].astype(jnp.bfloat16),
                     preferred_element_type=jnp.float32) + ba_ref[...]       # (TB, 2E)

    # One MXU push for every (s, b): (S*TB, E) @ (E, 2E). The reshape merges the
    # two leading axes; keep TB a multiple of 8 (or == B) so it is a layout
    # no-op rather than a VMEM copy.
    e_part = jnp.dot(enc.reshape(S * TB, E).astype(jnp.bfloat16),
                     wa_e_ref[...].astype(jnp.bfloat16),
                     preferred_element_type=jnp.float32).reshape(S, TB, H2)  # (S, TB, 2E)

    # TODO(synk): on v6e/v7x run this tanh/exp tail in bf16 (EUP-bound for small E);
    # keep f32 on v5e, which has no bf16 VPU/EUP path.
    z = jnp.tanh(h_part[None, :, :] + e_part)                                # (S, TB, 2E)

    # attn2 (2E -> 1) as elementwise mul + lane reduce (no M=1 matmul).  ba2 is
    # intentionally omitted: a uniform shift of the scores cancels in softmax.
    scores = jnp.sum(z * wa2_ref[...], axis=-1, keepdims=True)               # (S, TB, 1)

    # ---- softmax over the sequence axis (leading axis -> per-vreg VPU reduces)
    m = jnp.max(scores, axis=0, keepdims=True)                               # (1, TB, 1)
    ex = jnp.exp(scores - m)                                                 # (S, TB, 1)
    denom = jnp.sum(ex, axis=0, keepdims=True)                               # (1, TB, 1)
    # Approx reciprocal rides the (otherwise idle) EUP slot; weights sum to 1
    # within ~1e-3 relative.
    weights = ex * pl.reciprocal(denom, approx=True)                         # (S, TB, 1)

    # ---- attention_applied: VPU mul + leading-axis reduce (no M=1 bmm) -------
    applied = jnp.sum(weights * enc, axis=0)                                 # (TB, E) f32

    # ---- attn_combine(cat(decoder_out, applied)) + tanh, concat-free ---------
    out = jnp.tanh(
        jnp.dot(dec_ref[...].astype(jnp.bfloat16),
                wc_d_ref[...].astype(jnp.bfloat16),
                preferred_element_type=jnp.float32)
        + jnp.dot(applied.astype(jnp.bfloat16),
                  wc_a_ref[...].astype(jnp.bfloat16),
                  preferred_element_type=jnp.float32)
        + bc_ref[...])                                                       # (TB, D)

    # ---- single lane-dense (128-multiple) output slab: one unmasked store ----
    pieces = [out, applied]
    pad = P - (D + E)
    if pad:
        pieces.append(jnp.zeros((TB, pad), jnp.float32))
    packed_ref[...] = jnp.concatenate(pieces, axis=-1).astype(packed_ref.dtype)


def _pick_batch_tile(B, S, E, vmem_budget_bytes):
    """Largest batch tile whose live working set fits ~half the VMEM budget.

    Peak live f32 footprint per batch tile ~= enc block (double-buffered) plus
    the (S, TB, 2E) e_part / z intermediates  ~=  7 * S*TB*E*4 bytes.
    """
    per_row = 7 * S * E * 4
    tb = max(1, (vmem_budget_bytes // 2) // per_row)
    if tb >= B or B <= 8:
        return B
    return max(8, (tb // 8) * 8)       # keep the sublane dim a multiple of 8


def attention_module(hidden, decoder_out, encoder_states, params):
    """Pallas implementation of AttentionModule.forward (time-major encoder)."""
    B, D = hidden.shape
    S, _, E = encoder_states.shape
    P = _round_up(D + E, 128)          # lane-dense packed output width

    # Per-generation VMEM budget (v5e/v6e: 128 MiB, v7x: 64 MiB).  Fall back to
    # the smallest physical budget if the query is unavailable.
    vmem_cap = 64 * 1024 * 1024
    try:
        vmem_cap = int(getattr(pltpu.get_tpu_info(), "vmem_capacity_bytes", vmem_cap))
    except Exception:
        pass
    vmem_limit = (vmem_cap * 3) // 4   # leave headroom over the scoped default

    TB = _pick_batch_tile(B, S, E, vmem_limit)
    grid = (pl.cdiv(B, TB),)

    batch_blk = lambda b: (b, 0)
    const2 = lambda b: (0, 0)          # weights/biases stay VMEM-resident

    in_specs = [
        pl.BlockSpec((TB, D), batch_blk),                 # hidden
        pl.BlockSpec((TB, D), batch_blk),                 # decoder_out
        pl.BlockSpec((S, TB, E), lambda b: (0, b, 0)),    # encoder_states (time-major)
        pl.BlockSpec((D, 2 * E), const2),                 # wa_h
        pl.BlockSpec((E, 2 * E), const2),                 # wa_e
        pl.BlockSpec((1, 2 * E), const2),                 # ba
        pl.BlockSpec((1, 2 * E), const2),                 # wa2_row
        pl.BlockSpec((D, D), const2),                     # wc_dec
        pl.BlockSpec((E, D), const2),                     # wc_app
        pl.BlockSpec((1, D), const2),                     # bc
    ]
    out_specs = pl.BlockSpec((TB, P), batch_blk)

    # TODO(synk): for long S, add an "arbitrary" grid axis over sequence chunks
    # with an online softmax (running m/l/acc scratch) so the (S, TB, 2E)
    # intermediates stay bounded on v7x's 64 MiB VMEM.
    # TODO(synk): for small-batch decode, fuse several decoder steps into one
    # call via an extra "arbitrary" time axis so weights stay VMEM-resident and
    # the per-call ~0.35 us overhead amortizes.
    fn = pl.pallas_call(
        _attention_kernel,
        out_shape=jax.ShapeDtypeStruct((B, P), jnp.float32),
        grid=grid,
        in_specs=in_specs,
        out_specs=out_specs,
        compiler_params=pltpu.CompilerParams(
            dimension_semantics=("parallel",),   # shard batch tiles across v7x's 2 TCs
            vmem_limit_bytes=int(vmem_limit)),
    )
    packed = fn(hidden, decoder_out, encoder_states,
                params["wa_h"], params["wa_e"], params["ba"],
                params["wa2_row"],
                params["wc_dec"], params["wc_app"], params["bc"])
    return packed[:, :D], packed[:, D:D + E]


def attention_reference(hidden, decoder_out, enc, params):
    """Pure-JAX reference reproducing the PyTorch forward semantics (f32)."""
    S = enc.shape[0]
    wa = jnp.concatenate([params["wa_h"], params["wa_e"]], axis=0)       # (D+E, 2E)
    wc = jnp.concatenate([params["wc_dec"], params["wc_app"]], axis=0)   # (D+E, D)
    scores = []
    for i in range(S):
        x = jnp.concatenate([hidden, enc[i]], axis=1)                    # (B, D+E)
        z = jnp.tanh(x @ wa + params["ba"])                              # (B, 2E)
        scores.append(z @ params["wa2_row"].T + params["ba2"])           # (B, 1)
    scores = jnp.stack(scores, axis=1)[..., 0]                           # (B, S)
    w = jax.nn.softmax(scores, axis=-1)                                  # (B, S)
    applied = jnp.einsum("bs,sbe->be", w, enc)                           # (B, E)
    combined = jnp.concatenate([decoder_out, applied], axis=1)           # (B, D+E)
    out = jnp.tanh(combined @ wc + params["bc"])                         # (B, D)
    return out, applied


def init_params(key, enc_hidden, dec_hidden):
    """Deterministic PyTorch-Linear-like init, stored pre-split / pre-transposed
    in exactly the layout the kernel consumes (no per-call weight reshuffling)."""
    D, E = dec_hidden, enc_hidden
    k = jax.random.split(key, 6)

    def u(kk, shape, fan_in):
        lim = 1.0 / jnp.sqrt(jnp.float32(fan_in))
        return jax.random.uniform(kk, shape, jnp.float32, -lim, lim)

    w_attn = u(k[0], (D + E, 2 * E), D + E)          # attn: Linear(D+E -> 2E)
    w_comb = u(k[4], (D + E, D), D + E)              # attn_combine: Linear(D+E -> D)
    return {
        "wa_h":    w_attn[:D, :],                    # (D, 2E)
        "wa_e":    w_attn[D:, :],                    # (E, 2E)
        "ba":      u(k[1], (1, 2 * E), D + E),       # (1, 2E)
        "wa2_row": u(k[2], (1, 2 * E), 2 * E),       # attn2 weight, row layout
        "ba2":     u(k[3], (1, 1), 2 * E),           # reference only (cancels in softmax)
        "wc_dec":  w_comb[:D, :],                    # (D, D)
        "wc_app":  w_comb[D:, :],                    # (E, D)
        "bc":      u(k[5], (1, D), D + E),           # (1, D)
    }


if __name__ == "__main__":
    B, S = 2, 8           # batch, encoder sequence length
    E, D = 32, 32         # encoder_hidden_size, decoder_hidden_size

    key = jax.random.PRNGKey(0)
    k_h, k_d, k_e, k_p = jax.random.split(key, 4)

    hidden = jax.random.normal(k_h, (B, D), jnp.float32)
    decoder_out = jax.random.normal(k_d, (B, D), jnp.float32)
    encoder_states = jax.random.normal(k_e, (S, B, E), jnp.float32)   # time-major
    params = init_params(k_p, E, D)

    out, applied = attention_module(hidden, decoder_out, encoder_states, params)
    out = jax.block_until_ready(out)
    applied = jax.block_until_ready(applied)

    ref_out, ref_applied = attention_reference(hidden, decoder_out,
                                               encoder_states, params)

    assert out.shape == (B, D) and applied.shape == (B, E)
    # Tolerance covers bf16 MXU inputs + the EUP approximate reciprocal.
    assert jnp.allclose(out, ref_out, atol=5e-2, rtol=5e-2), \
        float(jnp.max(jnp.abs(out - ref_out)))
    assert jnp.allclose(applied, ref_applied, atol=5e-2, rtol=5e-2), \
        float(jnp.max(jnp.abs(applied - ref_applied)))

    print("KERNEL_OK")
</pallas_src>

<mosaic_0001>
module attributes {stable_mosaic.version = 11 : i64} {
  func.func @_attention_kernel(%arg0: i32, %arg1: memref<2x32xf32, #tpu.memory_space<vmem>>, %arg2: memref<2x32xf32, #tpu.memory_space<vmem>>, %arg3: memref<8x2x32xf32, #tpu.memory_space<vmem>>, %arg4: memref<32x64xf32, #tpu.memory_space<vmem>>, %arg5: memref<32x64xf32, #tpu.memory_space<vmem>>, %arg6: memref<1x64xf32, #tpu.memory_space<vmem>>, %arg7: memref<1x64xf32, #tpu.memory_space<vmem>>, %arg8: memref<32x32xf32, #tpu.memory_space<vmem>>, %arg9: memref<32x32xf32, #tpu.memory_space<vmem>>, %arg10: memref<1x32xf32, #tpu.memory_space<vmem>>, %arg11: memref<2x128xf32, #tpu.memory_space<vmem>>) attributes {dimension_semantics = [#tpu.dimension_semantics<parallel>], iteration_bounds = array<i64: 1>, scalar_prefetch = 0 : i64, scratch_operands = 0 : i64, tpu.core_type = #tpu.core_type<tc>, window_params = [{transform_indices = @transform_0, window_bounds = array<i64: 2, 32>}, {transform_indices = @transform_1, window_bounds = array<i64: 2, 32>}, {transform_indices = @transform_2, window_bounds = array<i64: 8, 2, 32>}, {pipeline_mode = #tpu.pipeline_mode<synchronous>, transform_indices = @transform_3, window_bounds = array<i64: 32, 64>}, {pipeline_mode = #tpu.pipeline_mode<synchronous>, transform_indices = @transform_4, window_bounds = array<i64: 32, 64>}, {pipeline_mode = #tpu.pipeline_mode<synchronous>, transform_indices = @transform_5, window_bounds = array<i64: 1, 64>}, {pipeline_mode = #tpu.pipeline_mode<synchronous>, transform_indices = @transform_6, window_bounds = array<i64: 1, 64>}, {pipeline_mode = #tpu.pipeline_mode<synchronous>, transform_indices = @transform_7, window_bounds = array<i64: 32, 32>}, {pipeline_mode = #tpu.pipeline_mode<synchronous>, transform_indices = @transform_8, window_bounds = array<i64: 32, 32>}, {pipeline_mode = #tpu.pipeline_mode<synchronous>, transform_indices = @transform_9, window_bounds = array<i64: 1, 32>}, {transform_indices = @transform_10, window_bounds = array<i64: 2, 128>}]} {
    %c0 = arith.constant 0 : index
    %c0_0 = arith.constant 0 : index
    %c0_1 = arith.constant 0 : index
    %0 = vector.load %arg3[%c0, %c0_0, %c0_1] : memref<8x2x32xf32, #tpu.memory_space<vmem>>, vector<8x2x32xf32>
    %c0_2 = arith.constant 0 : index
    %c0_3 = arith.constant 0 : index
    %1 = vector.load %arg1[%c0_2, %c0_3] : memref<2x32xf32, #tpu.memory_space<vmem>>, vector<2x32xf32>
    %2 = arith.truncf %1 : vector<2x32xf32> to vector<2x32xbf16>
    %c0_4 = arith.constant 0 : index
    %c0_5 = arith.constant 0 : index
    %3 = vector.load %arg4[%c0_4, %c0_5] : memref<32x64xf32, #tpu.memory_space<vmem>>, vector<32x64xf32>
    %4 = arith.truncf %3 : vector<32x64xf32> to vector<32x64xbf16>
    %cst = arith.constant dense<0.000000e+00> : vector<2x64xf32>
    %5 = tpu.matmul %2, %4, %cst {dimension_numbers = #tpu.dot_dimension_numbers<[1], [0], [0], [1], [0, 0, 1, 1], [], []>} : vector<2x32xbf16>, vector<32x64xbf16>, vector<2x64xf32> -> vector<2x64xf32>
    %c0_6 = arith.constant 0 : index
    %c0_7 = arith.constant 0 : index
    %6 = vector.load %arg6[%c0_6, %c0_7] : memref<1x64xf32, #tpu.memory_space<vmem>>, vector<1x64xf32>
    %7 = vector.broadcast %6 : vector<1x64xf32> to vector<2x64xf32>
    %8 = arith.addf %5, %7 : vector<2x64xf32>
    %9 = vector.shape_cast %0 : vector<8x2x32xf32> to vector<16x32xf32>
    %10 = arith.truncf %9 : vector<16x32xf32> to vector<16x32xbf16>
    %c0_8 = arith.constant 0 : index
    %c0_9 = arith.constant 0 : index
    %11 = vector.load %arg5[%c0_8, %c0_9] : memref<32x64xf32, #tpu.memory_space<vmem>>, vector<32x64xf32>
    %12 = arith.truncf %11 : vector<32x64xf32> to vector<32x64xbf16>
    %cst_10 = arith.constant dense<0.000000e+00> : vector<16x64xf32>
    %13 = tpu.matmul %10, %12, %cst_10 {dimension_numbers = #tpu.dot_dimension_numbers<[1], [0], [0], [1], [0, 0, 1, 1], [], []>} : vector<16x32xbf16>, vector<32x64xbf16>, vector<16x64xf32> -> vector<16x64xf32>
    %14 = vector.shape_cast %13 : vector<16x64xf32> to vector<8x2x64xf32>
    %15 = vector.shape_cast %8 : vector<2x64xf32> to vector<1x2x64xf32>
    %16 = vector.broadcast %15 : vector<1x2x64xf32> to vector<8x2x64xf32>
    %17 = arith.addf %16, %14 : vector<8x2x64xf32>
    %18 = math.tanh %17 : vector<8x2x64xf32>
    %c0_11 = arith.constant 0 : index
    %c0_12 = arith.constant 0 : index
    %19 = vector.load %arg7[%c0_11, %c0_12] : memref<1x64xf32, #tpu.memory_space<vmem>>, vector<1x64xf32>
    %20 = vector.shape_cast %19 : vector<1x64xf32> to vector<1x1x64xf32>
    %21 = vector.broadcast %20 : vector<1x1x64xf32> to vector<8x2x64xf32>
    %22 = arith.mulf %18, %21 : vector<8x2x64xf32>
    %cst_13 = arith.constant dense<0.000000e+00> : vector<8x2xf32>
    %23 = vector.multi_reduction <add>, %22, %cst_13 [2] : vector<8x2x64xf32> to vector<8x2xf32>
    %24 = vector.shape_cast %23 : vector<8x2xf32> to vector<8x2x1xf32>
    %cst_14 = arith.constant dense<0xFF800000> : vector<2x1xf32>
    %25 = vector.multi_reduction <maximumf>, %24, %cst_14 [0] : vector<8x2x1xf32> to vector<2x1xf32>
    %26 = vector.shape_cast %25 : vector<2x1xf32> to vector<1x2x1xf32>
    %27 = vector.broadcast %26 : vector<1x2x1xf32> to vector<8x2x1xf32>
    %28 = arith.subf %24, %27 : vector<8x2x1xf32>
    %29 = math.exp %28 : vector<8x2x1xf32>
    %cst_15 = arith.constant dense<0.000000e+00> : vector<2x1xf32>
    %30 = vector.multi_reduction <add>, %29, %cst_15 [0] : vector<8x2x1xf32> to vector<2x1xf32>
    %31 = vector.shape_cast %30 : vector<2x1xf32> to vector<1x2x1xf32>
    %32 = tpu.reciprocal %31 {approx = true} : vector<1x2x1xf32> -> vector<1x2x1xf32>
    %33 = vector.broadcast %32 : vector<1x2x1xf32> to vector<8x2x1xf32>
    %34 = arith.mulf %29, %33 : vector<8x2x1xf32>
    %35 = vector.broadcast %34 : vector<8x2x1xf32> to vector<8x2x32xf32>
    %36 = arith.mulf %35, %0 : vector<8x2x32xf32>
    %cst_16 = arith.constant dense<0.000000e+00> : vector<2x32xf32>
    %37 = vector.multi_reduction <add>, %36, %cst_16 [0] : vector<8x2x32xf32> to vector<2x32xf32>
    %c0_17 = arith.constant 0 : index
    %c0_18 = arith.constant 0 : index
    %38 = vector.load %arg2[%c0_17, %c0_18] : memref<2x32xf32, #tpu.memory_space<vmem>>, vector<2x32xf32>
    %39 = arith.truncf %38 : vector<2x32xf32> to vector<2x32xbf16>
    %c0_19 = arith.constant 0 : index
    %c0_20 = arith.constant 0 : index
    %40 = vector.load %arg8[%c0_19, %c0_20] : memref<32x32xf32, #tpu.memory_space<vmem>>, vector<32x32xf32>
    %41 = arith.truncf %40 : vector<32x32xf32> to vector<32x32xbf16>
    %cst_21 = arith.constant dense<0.000000e+00> : vector<2x32xf32>
    %42 = tpu.matmul %39, %41, %cst_21 {dimension_numbers = #tpu.dot_dimension_numbers<[1], [0], [0], [1], [0, 0, 1, 1], [], []>} : vector<2x32xbf16>, vector<32x32xbf16>, vector<2x32xf32> -> vector<2x32xf32>
    %43 = arith.truncf %37 : vector<2x32xf32> to vector<2x32xbf16>
    %c0_22 = arith.constant 0 : index
    %c0_23 = arith.constant 0 : index
    %44 = vector.load %arg9[%c0_22, %c0_23] : memref<32x32xf32, #tpu.memory_space<vmem>>, vector<32x32xf32>
    %45 = arith.truncf %44 : vector<32x32xf32> to vector<32x32xbf16>
    %cst_24 = arith.constant dense<0.000000e+00> : vector<2x32xf32>
    %46 = tpu.matmul %43, %45, %cst_24 {dimension_numbers = #tpu.dot_dimension_numbers<[1], [0], [0], [1], [0, 0, 1, 1], [], []>} : vector<2x32xbf16>, vector<32x32xbf16>, vector<2x32xf32> -> vector<2x32xf32>
    %47 = arith.addf %42, %46 : vector<2x32xf32>
    %c0_25 = arith.constant 0 : index
    %c0_26 = arith.constant 0 : index
    %48 = vector.load %arg10[%c0_25, %c0_26] : memref<1x32xf32, #tpu.memory_space<vmem>>, vector<1x32xf32>
    %49 = vector.broadcast %48 : vector<1x32xf32> to vector<2x32xf32>
    %50 = arith.addf %47, %49 : vector<2x32xf32>
    %51 = math.tanh %50 : vector<2x32xf32>
    %cst_27 = arith.constant 0.000000e+00 : f32
    %52 = vector.broadcast %cst_27 : f32 to vector<2x64xf32>
    %53 = tpu.concatenate %51, %37, %52 in 1 : vector<2x32xf32>, vector<2x32xf32>, vector<2x64xf32> -> vector<2x128xf32>
    %c0_28 = arith.constant 0 : index
    %c0_29 = arith.constant 0 : index
    %54 = vector.load %arg11[%c0_28, %c0_29] : memref<2x128xf32, #tpu.memory_space<vmem>>, vector<2x128xf32>
    tpu.vector_store %arg11[%c0_28, %c0_29], %53 {strides = array<i32>} : memref<2x128xf32, #tpu.memory_space<vmem>>, vector<2x128xf32>,
    return
  }
  func.func @transform_0(%arg0: i32) -> (i32, i32) {
    %c0_i32 = arith.constant 0 : i32
    %c0_i32_0 = arith.constant 0 : i32
    return %arg0, %c0_i32 : i32, i32
  }
  func.func @transform_1(%arg0: i32) -> (i32, i32) {
    %c0_i32 = arith.constant 0 : i32
    %c0_i32_0 = arith.constant 0 : i32
    return %arg0, %c0_i32 : i32, i32
  }
  func.func @transform_2(%arg0: i32) -> (i32, i32, i32) {
    %c0_i32 = arith.constant 0 : i32
    %c0_i32_0 = arith.constant 0 : i32
    %c0_i32_1 = arith.constant 0 : i32
    return %c0_i32, %arg0, %c0_i32_0 : i32, i32, i32
  }
  func.func @transform_3(%arg0: i32) -> (i32, i32) {
    %c0_i32 = arith.constant 0 : i32
    %c0_i32_0 = arith.constant 0 : i32
    %c0_i32_1 = arith.constant 0 : i32
    return %c0_i32, %c0_i32_0 : i32, i32
  }
  func.func @transform_4(%arg0: i32) -> (i32, i32) {
    %c0_i32 = arith.constant 0 : i32
    %c0_i32_0 = arith.constant 0 : i32
    %c0_i32_1 = arith.constant 0 : i32
    return %c0_i32, %c0_i32_0 : i32, i32
  }
  func.func @transform_5(%arg0: i32) -> (i32, i32) {
    %c0_i32 = arith.constant 0 : i32
    %c0_i32_0 = arith.constant 0 : i32
    %c0_i32_1 = arith.constant 0 : i32
    return %c0_i32, %c0_i32_0 : i32, i32
  }
  func.func @transform_6(%arg0: i32) -> (i32, i32) {
    %c0_i32 = arith.constant 0 : i32
    %c0_i32_0 = arith.constant 0 : i32
    %c0_i32_1 = arith.constant 0 : i32
    return %c0_i32, %c0_i32_0 : i32, i32
  }
  func.func @transform_7(%arg0: i32) -> (i32, i32) {
    %c0_i32 = arith.constant 0 : i32
    %c0_i32_0 = arith.constant 0 : i32
    %c0_i32_1 = arith.constant 0 : i32
    return %c0_i32, %c0_i32_0 : i32, i32
  }
  func.func @transform_8(%arg0: i32) -> (i32, i32) {
    %c0_i32 = arith.constant 0 : i32
    %c0_i32_0 = arith.constant 0 : i32
    %c0_i32_1 = arith.constant 0 : i32
    return %c0_i32, %c0_i32_0 : i32, i32
  }
  func.func @transform_9(%arg0: i32) -> (i32, i32) {
    %c0_i32 = arith.constant 0 : i32
    %c0_i32_0 = arith.constant 0 : i32
    %c0_i32_1 = arith.constant 0 : i32
    return %c0_i32, %c0_i32_0 : i32, i32
  }
  func.func @transform_10(%arg0: i32) -> (i32, i32) {
    %c0_i32 = arith.constant 0 : i32
    %c0_i32_0 = arith.constant 0 : i32
    return %arg0, %c0_i32 : i32, i32
  }
}

</mosaic_0001>

<bundles_post_ra>
// kernel: tpu_custom_call.1
= control target key start
LH: loop header
LB: loop body
LE: loop exit
PB: predicated region body
PF: predicated region fallthrough
CT: control target
= control target key end

     0   :  { %15 = vsyncpa [#allocation3], 0  ;;  %s1133_s0 = inlined_call_operand.hbm [shape: f32[2,32], index: 0, kind: input, shape index: {}]   ;;  %s1134_s1 = inlined_call_operand.vmem [shape: f32[2,32], index: 1, kind: input, shape index: {}]   ;;  %s1135_s2 = inlined_call_operand.hbm [shape: f32[8,2,32], index: 2, kind: input, shape index: {}]   ;;  %s1136_s3 = inlined_call_operand.hbm [shape: f32[32,64], index: 3, kind: input, shape index: {}]   ;;  %s1137_s4 = inlined_call_operand.hbm [shape: f32[32,64], index: 4, kind: input, shape index: {}]   ;;  %s1138_s5 = inlined_call_operand.vmem [shape: f32[1,64], index: 5, kind: input, shape index: {}]   ;;  %s1139_s6 = inlined_call_operand.vmem [shape: f32[1,64], index: 6, kind: input, shape index: {}]   ;;  %s1140_s7 = inlined_call_operand.hbm [shape: f32[32,32], index: 7, kind: input, shape index: {}]   ;;  %s1141_s8 = inlined_call_operand.hbm [shape: f32[32,32], index: 8, kind: input, shape index: {}]   ;;  %s1142_s9 = inlined_call_operand.vmem [shape: f32[1,32], index: 9, kind: input, shape index: {}]   ;;  %s1143_s10 = inlined_call_operand.hbm [shape: f32[2,128], index: 10, kind: output, shape index: {}]  }
   0x1   :  { %16 = vsyncpa [#allocation6], 0 }
   0x2   :  { %17 = vsyncpa [#allocation9], 0 }
   0x3   :  { %18 = vsyncpa [#allocation12], 0 }
   0x4   :  { %19 = vsyncpa [#allocation4], 0  ;;  %s868_s13 = smov [#allocation5]   ;;  %s704_s17 = scalar_lea.hbm %s1135_s2, 256 }
   0x5   :  { %s37_s14 = sshll.u32 %s868_s13, 4  ;;  %p705_p0 = scmp.ne.s32.totalorder %s1135_s2, %s704_s17  ;;  %s38_s14 = int_to_ptr.vmem [resolvable:$true] %s37_s14 }
   0x6   :  { %p708_p1 = scmp.lt.u32.totalorder %s704_s17, %s1135_s2 }
   0x8   :  { %p710_p2 = pnand %p708_p1, %p705_p0 }
   0xa   :  { %713 = shalt.err (!%p710_p2)
}
   0xb   :  { %s714_s22 = scalar_lea.vmem %s38_s14, 256  ;;  %p719_p4 = scmp.lt.s32.totalorder %s38_s14, %s38_s14 }
   0xc   :  { %p715_p3 = scmp.ne.s32.totalorder %s38_s14, %s714_s22  ;;  %p720_p5 = scmp.lt.s32.totalorder %s714_s22, %s714_s22 }
   0xe   :  { %p721_p6 = por %p720_p5, %p719_p4 }
  0x10   :  { %p722_p7 = pnand %p721_p6, %p715_p3 }
  0x12   :  { %725 = shalt.err (!%p722_p7)
}
  0x13   :  { %s869_s23 = smov 32   ;;  %s870_s24 = smov 2  }
  0x14   :  { %43 = dma.hbm_to_vmem [thread:$0]  %s1135_s2, 256, %s38_s14, [#allocation6], %s869_s23, %s869_s23, %s870_s24  }
  0x15   :  { %s871_s27 = smov [#allocation8]   ;;  %s872_s29 = smov [#allocation2]  }
  0x16   :  { %s61_s28 = sshll.u32 %s871_s27, 4  ;;  %s26_s30 = sshll.u32 %s872_s29, 4  ;;  %s62_s28 = int_to_ptr.vmem [resolvable:$true] %s61_s28  ;;  %s27_s30 = int_to_ptr.vmem [resolvable:$true] %s26_s30 }
  0x17   :  { %s726_s13 = scalar_lea.hbm %s1137_s4, 512 }
  0x18   :  { %p727_p8 = scmp.ne.s32.totalorder %s1137_s4, %s726_s13  ;;  %p730_p9 = scmp.lt.u32.totalorder %s726_s13, %s1137_s4 }
  0x1a   :  { %p732_p10 = pnand %p730_p9, %p727_p8 }
  0x1c   :  { %735 = shalt.err (!%p732_p10)
}
  0x1d   :  { %s736_s2 = scalar_lea.vmem %s62_s28, 512  ;;  %p741_p12 = scmp.lt.s32.totalorder %s62_s28, %s62_s28 }
  0x1e   :  { %p737_p11 = scmp.ne.s32.totalorder %s62_s28, %s736_s2  ;;  %p742_p13 = scmp.lt.s32.totalorder %s736_s2, %s736_s2 }
  0x20   :  { %p743_p0 = por %p742_p13, %p741_p12 }
  0x22   :  { %p744_p1 = pnand %p743_p0, %p737_p11 }
  0x24   :  { %747 = shalt.err (!%p744_p1)
}
  0x25   :  { %s873_s14 = smov 128   ;;  %s874_s19 = smov 8  }
  0x26   :  { %67 = dma.hbm_to_vmem [thread:$0]  %s1137_s4, 512, %s62_s28, [#allocation9], %s873_s14, %s873_s14, %s874_s19  }
  0x27   :  { %s748_s25 = scalar_lea.hbm %s1133_s0, 32 }
  0x28   :  { %p749_p2 = scmp.ne.s32.totalorder %s1133_s0, %s748_s25  ;;  %p752_p3 = scmp.lt.u32.totalorder %s748_s25, %s1133_s0 }
  0x2a   :  { %p754_p4 = pnand %p752_p3, %p749_p2 }
  0x2c   :  { %757 = shalt.err (!%p754_p4)
}
  0x2d   :  { %s758_s12 = scalar_lea.vmem %s27_s30, 32  ;;  %p763_p6 = scmp.lt.s32.totalorder %s27_s30, %s27_s30 }
  0x2e   :  { %p759_p5 = scmp.ne.s32.totalorder %s27_s30, %s758_s12  ;;  %p764_p7 = scmp.lt.s32.totalorder %s758_s12, %s758_s12 }
  0x30   :  { %p765_p8 = por %p764_p7, %p763_p6 }
  0x32   :  { %p766_p9 = pnand %p765_p8, %p759_p5 }
  0x34   :  { %769 = shalt.err (!%p766_p9)
}
  0x35   :  { %29 = dma.hbm_to_vmem [thread:$0]  %s1133_s0, 32, %s27_s30, [#allocation3]  }
  0x36   :  { %s875_s13 = smov [#allocation7]   ;;  %s876_s16 = smov [#allocation10]  }
  0x37   :  { %s49_s15 = sshll.u32 %s875_s13, 4  ;;  %s77_s17 = sshll.u32 %s876_s16, 4  ;;  %s50_s15 = int_to_ptr.vmem [resolvable:$true] %s49_s15  ;;  %s78_s17 = int_to_ptr.vmem [resolvable:$true] %s77_s17 }
  0x38   :  { %s770_s20 = scalar_lea.hbm %s1136_s3, 512 }
  0x39   :  { %p771_p10 = scmp.ne.s32.totalorder %s1136_s3, %s770_s20  ;;  %p774_p11 = scmp.lt.u32.totalorder %s770_s20, %s1136_s3 }
  0x3b   :  { %p776_p12 = pnand %p774_p11, %p771_p10 }
  0x3d   :  { %779 = shalt.err (!%p776_p12)
}
  0x3e   :  { %s780_s0 = scalar_lea.vmem %s50_s15, 512  ;;  %p785_p0 = scmp.lt.s32.totalorder %s50_s15, %s50_s15 }
  0x3f   :  { %p781_p13 = scmp.ne.s32.totalorder %s50_s15, %s780_s0  ;;  %p786_p1 = scmp.lt.s32.totalorder %s780_s0, %s780_s0 }
  0x41   :  { %p787_p2 = por %p786_p1, %p785_p0 }
  0x43   :  { %p788_p3 = pnand %p787_p2, %p781_p13 }
  0x45   :  { %791 = shalt.err (!%p788_p3)
}
  0x46   :  { %55 = dma.hbm_to_vmem [thread:$0]  %s1136_s3, 512, %s50_s15, [#allocation6], %s873_s14, %s873_s14, %s874_s19  }
  0x47   :  { %s792_s11 = scalar_lea.hbm %s1140_s7, 512 }
  0x48   :  { %p793_p4 = scmp.ne.s32.totalorder %s1140_s7, %s792_s11  ;;  %p796_p5 = scmp.lt.u32.totalorder %s792_s11, %s1140_s7 }
  0x4a   :  { %p798_p6 = pnand %p796_p5, %p793_p4 }
  0x4c   :  { %801 = shalt.err (!%p798_p6)
}
  0x4d   :  { %s802_s16 = scalar_lea.vmem %s78_s17, 512  ;;  %p807_p8 = scmp.lt.s32.totalorder %s78_s17, %s78_s17 }
  0x4e   :  { %p803_p7 = scmp.ne.s32.totalorder %s78_s17, %s802_s16  ;;  %p808_p9 = scmp.lt.s32.totalorder %s802_s16, %s802_s16 }
  0x50   :  { %p809_p10 = por %p808_p9, %p807_p8 }
  0x52   :  { %p810_p11 = pnand %p809_p10, %p803_p7 }
  0x54   :  { %813 = shalt.err (!%p810_p11)
}
  0x55   :  { %83 = dma.hbm_to_vmem [thread:$0]  %s1140_s7, 512, %s78_s17, [#allocation9], %s873_s14, %s873_s14, %s874_s19  }
  0x56   :  { %s877_s18 = smov [#allocation11]   ;;  %s814_s22 = scalar_lea.hbm %s1141_s8, 512 }
  0x57   :  { %s89_s2 = sshll.u32 %s877_s18, 4  ;;  %p815_p12 = scmp.ne.s32.totalorder %s1141_s8, %s814_s22  ;;  %s90_s2 = int_to_ptr.vmem [resolvable:$true] %s89_s2 }
  0x58   :  { %p818_p13 = scmp.lt.u32.totalorder %s814_s22, %s1141_s8 }
  0x5a   :  { %p820_p0 = pnand %p818_p13, %p815_p12 }
  0x5c   :  { %823 = shalt.err (!%p820_p0)
}
  0x5d   :  { %s824_s26 = scalar_lea.vmem %s90_s2, 512  ;;  %p829_p2 = scmp.lt.s32.totalorder %s90_s2, %s90_s2 }
  0x5e   :  { %p825_p1 = scmp.ne.s32.totalorder %s90_s2, %s824_s26  ;;  %p830_p3 = scmp.lt.s32.totalorder %s824_s26, %s824_s26 }
  0x60   :  { %p831_p4 = por %p830_p3, %p829_p2 }
  0x62   :  { %p832_p5 = pnand %p831_p4, %p825_p1 }
  0x64   :  { %835 = shalt.err (!%p832_p5)
}
  0x65   :  { %95 = dma.hbm_to_vmem [thread:$0]  %s1141_s8, 512, %s90_s2, [#allocation12], %s873_s14, %s873_s14, %s874_s19  }
  0x66   :  { %858 = dma.done.wait [#allocation3], 32  }
  0x67   :  { %859 = vsyncadd [#allocation3], 4294967264 }
  0x68   :  { %860 = dma.done.wait [#allocation6], 768  }
  0x69   :  { %861 = vsyncadd [#allocation6], 4294966528 }
  0x6a   :  { %862 = dma.done.wait [#allocation9], 1024  }
  0x6b   :  { %863 = vsyncadd [#allocation9], 4294966272 }
  0x6c   :  { %864 = dma.done.wait [#allocation12], 512  }
  0x6d   :  { %865 = vsyncadd [#allocation12], 4294966784  ;;  %v878_v0 = vmov 0.0   ;;  %v197_v1 = vlaneseq  ;;  %vm879_vm0 = vmmov 0   ;;  %v880_v2 = vmov 1983009808  }
  0x6e   :  { %622 = vmatprep.subr.bf16.mxu0 %v878_v0  ;;  %630 = vmatprep.subr.bf16.mxu1 %v878_v0  ;;  %v195_v3 = vunpack.c.l.s4 %v880_v2  ;;  %v127_v6 = vld [vmem:[#allocation7] sm:$0xff]  ;;  %v128_v7 = vld [vmem:[#allocation7 + $0x8] sm:$0xff]  ;;  %v129_v11 = vld [vmem:[#allocation7 + $0x10] sm:$0xff]  ;;  %vm140_vm1 = vcmask 261120   ;;  %vm354_vm2 = vcmask 517120   ;;  %vm379_vm3 = vcmask 1041408  }
  0x6f   :  { %626 = vmatprep.mubr.msk.bf16.mxu0 %vm879_vm0, %v878_v0  ;;  %634 = vmatprep.mubr.msk.bf16.mxu1 %vm879_vm0, %v878_v0  ;;  %v198_v5 = vshrl.u32 %v197_v1, 7  ;;  %v229_v8 = vld [vmem:[#allocation8] sm:$0xff]  ;;  %v131_v9 = vpack.c.bf16 %v128_v7, %v127_v6  ;;  %v230_v10 = vld [vmem:[#allocation8 + $0x8] sm:$0xff]  ;;  %v130_v12 = vld [vmem:[#allocation7 + $0x18] sm:$0xff]  ;;  %vm451_vm4 = vcmask 254976   ;;  %s881_s11 = smov [#allocation13]  }
  0x70   :  { %v196_v4 = vunpack.c.0.s8 %v195_v3  ;;  %v233_v13 = vpack.c.bf16 %v230_v10, %v229_v8  ;;  %v231_v14 = vld [vmem:[#allocation8 + $0x10] sm:$0xff]  ;;  %v232_v15 = vld [vmem:[#allocation8 + $0x18] sm:$0xff]  ;;  %v125_v16 = vld [vmem:[#allocation2] sm:$0x3]  ;;  %v132_v18 = vpack.c.bf16 %v130_v12, %v129_v11  ;;  %vm582_vm5 = vcmask 523264  }
  0x71   :  { %623 = vmatpush3.bf16.msra.mxu0 %v131_v9  ;;  %v1029_v19 = vld [vmem:[#allocation5] sm:$0x3]  ;;  %v1031_v20 = vld [vmem:[#allocation5 + $0x2] sm:$0x3]  ;;  %v1033_v21 = vld [vmem:[#allocation5 + $0x4] sm:$0x3]  ;;  %v234_v22 = vpack.c.bf16 %v232_v15, %v231_v14  ;;  %v126_v31 = vpack.c.bf16 %v125_v16, %v125_v16 }
  0x72   :  { %v199_v17 = vsub.s32 %v196_v4, %v198_v5  ;;  %631 = vmatpush3.bf16.msra.mxu1 %v233_v13  ;;  %624 = vmatprep.subr.bf16.mxu0 %v878_v0  ;;  %v1036_v23 = vld [vmem:[#allocation5 + $0x6] sm:$0x3]  ;;  %v1038_v24 = vld [vmem:[#allocation5 + $0x8] sm:$0x3]  ;;  %v1040_v25 = vld [vmem:[#allocation5 + $0xa] sm:$0x3]  ;;  %v192_v26 = vcombine.low %v1029_v19, %v1031_v20 }
  0x73   :  { %632 = vmatprep.subr.bf16.mxu1 %v878_v0  ;;  %v1045_v27 = vld [vmem:[#allocation5 + $0xc] sm:$0x3]  ;;  %v1047_v28 = vld [vmem:[#allocation5 + $0xe] sm:$0x3]  ;;  %v193_v29 = vcombine.low %v1033_v21, %v1036_v23  ;;  %v209_v30 = vcombine.low %v1038_v24, %v1040_v25  ;;  %v603_v40 = vld [vmem:[%s1138_s5] ss:$0 sm:$0xff] }
  0x74   :  { %v200_v32 = vrot.slane %v192_v26, %v199_v17  ;;  %v210_v33 = vcombine.low %v1045_v27, %v1047_v28  ;;  %v606_v5 = vld [vmem:[%s1139_s6] ss:$0 sm:$0xff] }
  0x75   :  { %625 = vmatpush3.bf16.msra.mxu0 %v132_v18  ;;  %v207_v34 = vrot.slane %v193_v29, %v199_v17  ;;  %v217_v35 = vrot.slane %v209_v30, %v199_v17 }
  0x76   :  { %633 = vmatpush3.bf16.msra.mxu1 %v234_v22  ;;  %v224_v36 = vrot.slane %v210_v33, %v199_v17  ;;  %638 = vmatprep.subr.bf16.mxu0 %v878_v0 }
  0x77   :  { %v208_v37 = vcombine.low %v200_v32, %v207_v34  ;;  %646 = vmatprep.subr.bf16.mxu1 %v878_v0 }
  0x78   :  { %627 = vmatmul.mubr.msk.bf16.vlgmr.msra.gmra.mrb[0].mxu0 %vm140_vm1, %v126_v31  ;;  %v225_v38 = vcombine.low %v217_v35, %v224_v36 }
  0x79   :  { %642 = vmatprep.mubr.msk.bf16.mxu0 %vm879_vm0, %v878_v0 }
  0x7a   :  { %v228_v39 = vpack.c.bf16 %v225_v38, %v208_v37  ;;  %v469_v38 = vld [vmem:[#allocation10] sm:$0xff] }
  0x7c   :  { %635 = vmatmul.mubr.msk.bf16.vlgmr.msra.gmra.mrb[0].mxu1 %vm140_vm1, %v228_v39  ;;  %v470_v39 = vld [vmem:[#allocation10 + $0x8] sm:$0xff] }
  0x7d   :  { %650 = vmatprep.mubr.msk.bf16.mxu1 %vm879_vm0, %v878_v0 }
 0x14b   :  { %v178_v41 = vpop.f32.mrb[0].mxu0 }
 0x14c   :  { %v628_v42 = vpop.f32.mrb[1].mxu0  ;;  %v179_v44 = vadd.f32 %v603_v40, %v178_v41  ;;  %v476_v40 = vld [vmem:[#allocation11] sm:$0xff]  ;;  %v473_v41 = vpack.c.bf16 %v470_v39, %v469_v38 }
 0x14d   :  { %v181_v43 = vpop.f32.mrb[2].mxu0  ;;  %v477_v42 = vld [vmem:[#allocation11 + $0x8] sm:$0xff] }
 0x14e   :  { %v629_v45 = vpop.f32.mrb[3].mxu0  ;;  %v471_v43 = vld [vmem:[#allocation10 + $0x10] sm:$0xff]  ;;  %647 = vmatpush3.bf16.msra.mxu1 %v473_v41 }
 0x14f   :  { %v272_v46 = vpop.f32.mrb[0].mxu1  ;;  %v480_v45 = vpack.c.bf16 %v477_v42, %v476_v40  ;;  %648 = vmatprep.subr.bf16.mxu1 %v878_v0 }
 0x150   :  { %v281_v47 = vcombine.high %v272_v46, %v272_v46  ;;  %v288_v48 = vrot.slane %v272_v46, %v199_v17  ;;  %v636_v49 = vpop.f32.mrb[1].mxu1  ;;  %v478_v46 = vld [vmem:[#allocation11 + $0x10] sm:$0xff] }
 0x151   :  { %v275_v50 = vpop.f32.mrb[2].mxu1  ;;  %v467_v49 = vld [vmem:[%s1134_s1] sm:$0x3]  ;;  %639 = vmatpush3.bf16.msra.mxu0 %v480_v45 }
 0x152   :  { %v295_v51 = vrot.slane %v281_v47, %v199_v17  ;;  %v296_v52 = vcombine.high %v288_v48, %v288_v48  ;;  %v323_v53 = vadd.f32 %v288_v48, %v179_v44  ;;  %v298_v54 = vcombine.high %v275_v50, %v275_v50  ;;  %v637_v55 = vpop.f32.mrb[3].mxu1  ;;  %v479_v47 = vld [vmem:[#allocation11 + $0x18] sm:$0xff]  ;;  %640 = vmatprep.subr.bf16.mxu0 %v878_v0 }
 0x153   :  { %v305_v56 = vrot.slane %v275_v50, %v199_v17  ;;  %v481_v50 = vpack.c.bf16 %v479_v47, %v478_v46 }
 0x154   :  { %v297_v57 = vcombine.high %v295_v51, %v295_v51  ;;  %v324_v58 = vadd.f32 %v296_v52, %v179_v44  ;;  %v325_v59 = vadd.f32 %v295_v51, %v179_v44  ;;  %668 = vtanh.f32 %v323_v53 }
 0x155   :  { %v312_v60 = vrot.slane %v298_v54, %v199_v17  ;;  %v313_v61 = vcombine.high %v305_v56, %v305_v56  ;;  %v327_v62 = vadd.f32 %v305_v56, %v179_v44  ;;  %v468_v51 = vpack.c.bf16 %v467_v49, %v467_v49  ;;  %641 = vmatpush3.bf16.msra.mxu0 %v481_v50 }
 0x156   :  { %v326_v63 = vadd.f32 %v297_v57, %v179_v44  ;;  %670 = vtanh.f32 %v324_v58 }
 0x157   :  { %672 = vtanh.f32 %v325_v59  ;;  %v314_v1 = vcombine.high %v312_v60, %v312_v60  ;;  %v328_v2 = vadd.f32 %v313_v61, %v179_v44  ;;  %v329_v3 = vadd.f32 %v312_v60, %v179_v44 }
 0x158   :  { %674 = vtanh.f32 %v326_v63 }
 0x159   :  { %v330_v4 = vadd.f32 %v314_v1, %v179_v44  ;;  %676 = vtanh.f32 %v327_v62  ;;  %v472_v44 = vld [vmem:[#allocation10 + $0x18] sm:$0xff] }
 0x15a   :  { %678 = vtanh.f32 %v328_v2  ;;  %v474_v48 = vpack.c.bf16 %v472_v44, %v471_v43 }
 0x15b   :  { %680 = vtanh.f32 %v329_v3 }
 0x15c   :  { %682 = vtanh.f32 %v330_v4  ;;  %649 = vmatpush3.bf16.msra.mxu1 %v474_v48 }
 0x15e   :  { %v669_v6 = vpop.eup %668 }
 0x15f   :  { %v346_v7 = vmul.f32 %v669_v6, %v606_v5  ;;  %651 = vmatmul.mubr.msk.bf16.vlgmr.msra.gmra.mrb[4].mxu1 %vm140_vm1, %v468_v51 }
 0x160   :  { %v671_v8 = vpop.eup %670 }
 0x161   :  { %v673_v9 = vpop.eup %672  ;;  %v355_v10 = vsel %vm354_vm2, %v346_v7, 0.0  ;;  %v347_v11 = vmul.f32 %v671_v8, %v606_v5 }
 0x162   :  { %v675_v12 = vpop.eup %674  ;;  %356 = vadd.xlane.f32.xlu0 %v355_v10  ;;  %v348_v13 = vmul.f32 %v673_v9, %v606_v5 }
 0x163   :  { %v677_v14 = vpop.eup %676  ;;  %v349_v16 = vmul.f32 %v675_v12, %v606_v5  ;;  %v358_v18 = vsel %vm354_vm2, %v347_v11, 0.0 }
 0x164   :  { %v361_v15 = vsel %vm354_vm2, %v348_v13, 0.0  ;;  %v679_v17 = vpop.eup %678  ;;  %v350_v22 = vmul.f32 %v677_v14, %v606_v5 }
 0x165   :  { %362 = vadd.xlane.f32.xlu1 %v361_v15  ;;  %v681_v26 = vpop.eup %680  ;;  %v364_v29 = vsel %vm354_vm2, %v349_v16, 0.0  ;;  %v351_v30 = vmul.f32 %v679_v17, %v606_v5 }
 0x166   :  { %359 = vadd.xlane.f32.xlu0 %v358_v18  ;;  %v683_v31 = vpop.eup %682  ;;  %v367_v32 = vsel %vm354_vm2, %v350_v22, 0.0  ;;  %v352_v33 = vmul.f32 %v681_v26, %v606_v5 }
 0x167   :  { %v370_v34 = vsel %vm354_vm2, %v351_v30, 0.0  ;;  %v353_v35 = vmul.f32 %v683_v31, %v606_v5 }
 0x168   :  { %v373_v36 = vsel %vm354_vm2, %v352_v33, 0.0 }
 0x169   :  { %365 = vadd.xlane.f32.xlu1 %v364_v29  ;;  %v376_v37 = vsel %vm354_vm2, %v353_v35, 0.0 }
 0x16a   :  { %368 = vadd.xlane.f32.xlu0 %v367_v32 }
 0x16d   :  { %371 = vadd.xlane.f32.xlu1 %v370_v34 }
 0x16e   :  { %374 = vadd.xlane.f32.xlu0 %v373_v36 }
 0x171   :  { %377 = vadd.xlane.f32.xlu1 %v376_v37 }
 0x1ef   :  { %v357_v52 = vpop.xlane.xlu0 %356 }
 0x1f0   :  { %v380_v1 = vsel %vm379_vm3, %v357_v52, -inf }
 0x1f2   :  { %v363_v53 = vpop.xlane.xlu1 %362 }
 0x1f3   :  { %v360_v54 = vpop.xlane.xlu0 %359  ;;  %v382_v2 = vsel %vm379_vm3, %v363_v53, -inf }
 0x1f4   :  { %v381_v60 = vsel %vm379_vm3, %v360_v54, -inf }
 0x1f6   :  { %v366_v55 = vpop.xlane.xlu1 %365 }
 0x1f7   :  { %v369_v56 = vpop.xlane.xlu0 %368  ;;  %v383_v3 = vsel %vm379_vm3, %v366_v55, -inf }
 0x1f8   :  { %v384_v61 = vsel %vm379_vm3, %v369_v56, -inf }
 0x1f9   :  { %v385_v5 = vmax.f32 %v380_v1, %v384_v61 }
 0x1fa   :  { %v372_v57 = vpop.xlane.xlu1 %371 }
 0x1fb   :  { %v386_v58 = vsel %vm379_vm3, %v372_v57, -inf  ;;  %v375_v59 = vpop.xlane.xlu0 %374 }
 0x1fc   :  { %v388_v0 = vsel %vm379_vm3, %v375_v59, -inf  ;;  %v387_v62 = vmax.f32 %v381_v60, %v386_v58 }
 0x1fd   :  { %v389_v6 = vmax.f32 %v382_v2, %v388_v0 }
 0x1fe   :  { %v378_v63 = vpop.xlane.xlu1 %377  ;;  %v392_v8 = vmax.f32 %v385_v5, %v387_v62 }
 0x1ff   :  { %v390_v4 = vsel %vm379_vm3, %v378_v63, -inf }
 0x200   :  { %v391_v7 = vmax.f32 %v383_v3, %v390_v4 }
 0x202   :  { %v393_v9 = vmax.f32 %v389_v6, %v391_v7 }
 0x204   :  { %v394_v10 = vmax.f32 %v392_v8, %v393_v9 }
 0x206   :  { %v395_v11 = vsub.f32 %v357_v52, %v394_v10  ;;  %v396_v12 = vsub.f32 %v360_v54, %v394_v10  ;;  %v397_v13 = vsub.f32 %v363_v53, %v394_v10  ;;  %v398_v14 = vsub.f32 %v366_v55, %v394_v10 }
 0x207   :  { %v399_v15 = vsub.f32 %v369_v56, %v394_v10  ;;  %v400_v22 = vsub.f32 %v372_v57, %v394_v10  ;;  %v401_v29 = vsub.f32 %v375_v59, %v394_v10  ;;  %v402_v31 = vsub.f32 %v378_v63, %v394_v10 }
 0x208   :  { %v403_v16 = vmul.f32 1.442695, %v395_v11  ;;  %v405_v17 = vmul.f32 1.442695, %v396_v12  ;;  %v407_v18 = vmul.f32 1.442695, %v397_v13 }
 0x209   :  { %v409_v26 = vmul.f32 1.442695, %v398_v14  ;;  %v411_v30 = vmul.f32 1.442695, %v399_v15  ;;  %v413_v32 = vmul.f32 1.442695, %v400_v22 }
 0x20a   :  { %684 = vpow2.f32 %v403_v16  ;;  %v415_v33 = vmul.f32 1.442695, %v401_v29  ;;  %v417_v34 = vmul.f32 1.442695, %v402_v31 }
 0x20b   :  { %686 = vpow2.f32 %v405_v17 }
 0x20c   :  { %688 = vpow2.f32 %v407_v18 }
 0x20d   :  { %690 = vpow2.f32 %v409_v26 }
 0x20e   :  { %692 = vpow2.f32 %v411_v30 }
 0x20f   :  { %694 = vpow2.f32 %v413_v32 }
 0x210   :  { %696 = vpow2.f32 %v415_v33 }
 0x211   :  { %698 = vpow2.f32 %v417_v34 }
 0x214   :  { %v685_v35 = vpop.eup %684 }
 0x215   :  { %v687_v36 = vpop.eup %686  ;;  %v419_v37 = vsel %vm379_vm3, %v685_v35, 0.0 }
 0x216   :  { %v689_v38 = vpop.eup %688  ;;  %v420_v39 = vsel %vm379_vm3, %v687_v36, 0.0 }
 0x217   :  { %v691_v40 = vpop.eup %690  ;;  %v421_v41 = vadd.f32 %v420_v39, %v419_v37  ;;  %v422_v42 = vsel %vm379_vm3, %v689_v38, 0.0 }
 0x218   :  { %v693_v43 = vpop.eup %692  ;;  %v424_v45 = vsel %vm379_vm3, %v691_v40, 0.0 }
 0x219   :  { %v423_v44 = vadd.f32 %v422_v42, %v421_v41  ;;  %v695_v46 = vpop.eup %694  ;;  %v426_v48 = vsel %vm379_vm3, %v693_v43, 0.0 }
 0x21a   :  { %v697_v49 = vpop.eup %696  ;;  %v428_v51 = vsel %vm379_vm3, %v695_v46, 0.0 }
 0x21b   :  { %v425_v47 = vadd.f32 %v424_v45, %v423_v44  ;;  %v699_v52 = vpop.eup %698  ;;  %v430_v54 = vsel %vm379_vm3, %v697_v49, 0.0 }
 0x21c   :  { %v432_v56 = vsel %vm379_vm3, %v699_v52, 0.0 }
 0x21d   :  { %v427_v50 = vadd.f32 %v426_v48, %v425_v47 }
 0x21f   :  { %v429_v53 = vadd.f32 %v428_v51, %v427_v50 }
 0x221   :  { %v431_v55 = vadd.f32 %v430_v54, %v429_v53 }
 0x223   :  { %v433_v57 = vadd.f32 %v432_v56, %v431_v55 }
 0x225   :  { %700 = vrcp.f32 %v433_v57 }
 0x22f   :  { %v701_v58 = vpop.eup %700 }
 0x230   :  { %v435_v59 = vmul.f32 %v701_v58, %v685_v35  ;;  %v436_v60 = vmul.f32 %v701_v58, %v687_v36  ;;  %v437_v61 = vmul.f32 %v701_v58, %v689_v38  ;;  %v438_v0 = vmul.f32 %v701_v58, %v691_v40 }
 0x231   :  { %v439_v62 = vmul.f32 %v701_v58, %v693_v43  ;;  %v440_v3 = vmul.f32 %v701_v58, %v695_v46  ;;  %v441_v8 = vmul.f32 %v701_v58, %v697_v49  ;;  %v442_v12 = vmul.f32 %v701_v58, %v699_v52 }
 0x232   :  { %v443_v63 = vmul.f32 %v435_v59, %v1029_v19  ;;  %v444_v1 = vmul.f32 %v436_v60, %v1031_v20  ;;  %v445_v2 = vmul.f32 %v437_v61, %v1033_v21  ;;  %v446_v4 = vmul.f32 %v438_v0, %v1036_v23 }
 0x233   :  { %v447_v9 = vmul.f32 %v439_v62, %v1038_v24  ;;  %v448_v19 = vmul.f32 %v440_v3, %v1040_v25  ;;  %v449_v13 = vmul.f32 %v441_v8, %v1045_v27  ;;  %v450_v15 = vmul.f32 %v442_v12, %v1047_v28  ;;  %v562_v27 = vpop.f32.mrb[4].mxu1  ;;  %v609_v28 = vld [vmem:[%s1142_s9] ss:$0 sm:$0xff] }
 0x234   :  { %v452_v5 = vsel %vm451_vm4, %v443_v63, 0.0  ;;  %v453_v6 = vsel %vm451_vm4, %v444_v1, 0.0  ;;  %v455_v10 = vsel %vm451_vm4, %v445_v2, 0.0  ;;  %v457_v20 = vsel %vm451_vm4, %v446_v4, 0.0  ;;  %v652_v29 = vpop.f32.mrb[5].mxu1 }
 0x235   :  { %v454_v7 = vadd.f32 %v453_v6, %v452_v5  ;;  %v459_v23 = vsel %vm451_vm4, %v447_v9, 0.0  ;;  %v461_v16 = vsel %vm451_vm4, %v448_v19, 0.0  ;;  %v463_v24 = vsel %vm451_vm4, %v449_v13, 0.0  ;;  %v565_v30 = vpop.f32.mrb[6].mxu1 }
 0x236   :  { %v465_v22 = vsel %vm451_vm4, %v450_v15, 0.0  ;;  %v653_v31 = vpop.f32.mrb[7].mxu1 }
 0x237   :  { %v456_v11 = vadd.f32 %v455_v10, %v454_v7 }
 0x239   :  { %v458_v21 = vadd.f32 %v457_v20, %v456_v11 }
 0x23b   :  { %v460_v14 = vadd.f32 %v459_v23, %v458_v21 }
 0x23d   :  { %v462_v17 = vadd.f32 %v461_v16, %v460_v14 }
 0x23f   :  { %v464_v18 = vadd.f32 %v463_v24, %v462_v17 }
 0x241   :  { %v466_v26 = vadd.f32 %v465_v22, %v464_v18 }
 0x243   :  { %578 = vrot.lane.b32.xlu0 %v466_v26, %s869_s23  ;;  %v475_v25 = vpack.c.bf16 %v466_v26, %v466_v26  ;;  %s591_s23 = sshll.u32 %s881_s11, 4  ;;  %s592_s23 = int_to_ptr.vmem [resolvable:$true] %s591_s23 }
 0x244   :  { %s836_s12 = scalar_lea.vmem %s592_s23, 32  ;;  %p841_p7 = scmp.lt.s32.totalorder %s592_s23, %s592_s23 }
 0x245   :  { %643 = vmatmul.mubr.msk.bf16.vlgmr.msra.gmra.mrb[4].mxu0 %vm140_vm1, %v475_v25  ;;  %p837_p6 = scmp.ne.s32.totalorder %s592_s23, %s836_s12  ;;  %p842_p8 = scmp.lt.s32.totalorder %s836_s12, %s836_s12 }
 0x247   :  { %p843_p9 = por %p842_p8, %p841_p7 }
 0x249   :  { %p844_p10 = pnand %p843_p9, %p837_p6 }
 0x2b5   :  { %v579_v39 = vpop.permute.xlu0 %578 }
 0x318   :  { %v519_v32 = vpop.f32.mrb[4].mxu0 }
 0x319   :  { %v563_v33 = vadd.f32 %v562_v27, %v519_v32  ;;  %v644_v34 = vpop.f32.mrb[5].mxu0 }
 0x31a   :  { %v522_v35 = vpop.f32.mrb[6].mxu0 }
 0x31b   :  { %v575_v36 = vadd.f32 %v609_v28, %v563_v33  ;;  %v645_v37 = vpop.f32.mrb[7].mxu0 }
 0x31d   :  { %702 = vtanh.f32 %v575_v36 }
 0x327   :  { %v703_v38 = vpop.eup %702 }
 0x328   :  { %v581_v40 = vsel %vm140_vm1, %v703_v38, %v579_v39 }
 0x329   :  { %v583_v41 = vsel %vm582_vm5, %v581_v40, 0.0 }
 0x32a   :  { %584 = vst [vmem:[#allocation13] sm:$0x3] %v583_v41 }
 0x32b   :  { %847 = shalt.err (!%p844_p10)
}
 0x32c   :  { %s848_s28 = scalar_lea.hbm %s1143_s10, 32 }
 0x32d   :  { %p849_p11 = scmp.ne.s32.totalorder %s1143_s10, %s848_s28  ;;  %p852_p12 = scmp.lt.u32.totalorder %s848_s28, %s1143_s10 }
 0x32f   :  { %p854_p13 = pnand %p852_p12, %p849_p11 }
 0x331   :  { %857 = shalt.err (!%p854_p13)
}
 0x332   :  { %594 = dma.vmem_to_hbm [thread:$0]  %s592_s23, 32, %s1143_s10, [#allocation4]  }
 0x333   :  { %866 = dma.done.wait [#allocation4], 32  }
 0x334   :  { %867 = vsyncadd [#allocation4], 4294967264 }
 0x335   :  { %598 = vsyncpa [#allocation3], 1 }
 0x336   :  { %599 = vsyncpa [#allocation6], 1 }
 0x337   :  { %600 = vsyncpa [#allocation9], 1 }
 0x338   :  { %601 = vsyncpa [#allocation12], 1 }
 0x339   :  { %602 = vsyncpa [#allocation4], 1 }

</bundles_post_ra>
